<compile_context>
chip_gen: v5e
topology: v5e:2x2
jax: 0.10.0
libtpu: 0.0.40
codegen_flags: <defaults>
</compile_context>

<pallas_src>
import functools

import numpy as np
import jax
import jax.numpy as jnp
from jax.experimental import pallas as pl
from jax.experimental.pallas import tpu as pltpu


def make_resample_kernel(k):
    """2D normalized resample kernel from a 1D magnitude list (numpy)."""
    k = np.asarray(k, dtype=np.float32)
    if k.ndim == 1:
        k = np.outer(k, k)
    k = k / k.sum()
    return k


def _round_up(x, m):
    return ((x + m - 1) // m) * m


def _upfirdn_down_kernel(xpp_ref, out_ref, *, taps, Ho, Wo):
    # xpp_ref: (factor*factor, Hpp, Wpp, blk_nc)  -- N*C on the 128-lane axis
    # out_ref: (Ho, Wo, blk_nc)                   -- lane-dense, unmasked stores
    # Polyphase decimating FIR: every tap is a contiguous (Ho, Wo, blk_nc) slice
    # of one phase plane, scaled and accumulated in f32 (VPU).
    acc = jnp.zeros(out_ref.shape, jnp.float32)
    for phase, a, b, w in taps:
        acc = acc + w * xpp_ref[phase, a:a + Ho, b:b + Wo, :].astype(jnp.float32)
    out_ref[...] = acc.astype(out_ref.dtype)


def upfirdn_downsample(x, resample_kernel=(1, 3, 3, 1), factor=2):
    """Equivalent of UpFirDnDownsample(resample_kernel, factor)(x), x in NCHW."""
    k = make_resample_kernel(resample_kernel)
    kh, kw = k.shape
    pad = kh - factor
    pad0, pad1 = (pad + 1) // 2, pad // 2

    N, C, H, W = x.shape
    NC = N * C
    f = factor
    Ho = (H + pad0 + pad1 - kh) // f + 1
    Wo = (W + pad0 + pad1 - kw) // f + 1

    # phase-plane extents (ceil so every phase has a uniform shape)
    A = -(-kh // f)
    B = -(-kw // f)
    Hpp, Wpp = Ho + A, Wo + B

    # --- lane-dense tiling over the folded N*C axis -------------------------
    LANES = 128
    NCp = _round_up(NC, LANES)
    m = NCp // LANES
    itemsize = x.dtype.itemsize

    # Generation-aware VMEM budget (v7x: 64 MiB physical, v5e/v6e: 128 MiB).
    try:
        vmem_cap = int(pltpu.get_tpu_info().vmem_capacity_bytes)
    except Exception:
        vmem_cap = 64 * 1024 * 1024  # conservative fallback (v7x)
    vmem_limit = int(vmem_cap * 3 // 4)
    block_budget = vmem_limit // 2  # headroom under the scoped limit

    # double-buffered (input block + output block) bytes per 128-lane unit
    per_unit = 2 * (f * f * Hpp * Wpp + Ho * Wo) * itemsize * LANES
    max_units = max(1, block_budget // per_unit)
    cap_units = max_units
    if m >= 2:
        # keep >=2 grid steps so v7x's two TensorCores both get work
        cap_units = max(1, min(cap_units, m // 2))
    d = 1
    for cand in range(1, m + 1):
        if m % cand == 0 and cand <= cap_units:
            d = cand
    blk_nc = d * LANES
    grid_nc = m // d
    # TODO(synk): add a halo'd spatial grid axis (tiling Hpp into Ho_tile + A row
    # blocks) for very large H*W where even a blk_nc=128 block exceeds VMEM.

    # --- glue: zero-pad + polyphase split + NC-last layout in one transpose ---
    # xpp[py*f+px, i, j, nc] = x_padded[nc, py + f*i, px + f*j]
    xf = x.reshape(NC, H, W)
    xp = jnp.pad(
        xf,
        ((0, NCp - NC),
         (pad0, f * Hpp - (H + pad0)),
         (pad0, f * Wpp - (W + pad0))))
    xpp = xp.reshape(NCp, Hpp, f, Wpp, f)
    xpp = xpp.transpose(2, 4, 1, 3, 0).reshape(f * f, Hpp, Wpp, NCp)

    # static tap table (kernel values baked in at trace time)
    kflip = k[::-1, ::-1]  # conv2d(x, flip(k)) == true convolution with k
    taps = []
    for ky in range(kh):
        for kx in range(kw):
            py, a = ky % f, ky // f
            px, b = kx % f, kx // f
            taps.append((py * f + px, a, b, float(kflip[ky, kx])))
    taps = tuple(taps)

    kern = functools.partial(_upfirdn_down_kernel, taps=taps, Ho=Ho, Wo=Wo)
    out = pl.pallas_call(
        kern,
        out_shape=jax.ShapeDtypeStruct((Ho, Wo, NCp), x.dtype),
        grid=(grid_nc,),
        in_specs=[pl.BlockSpec((f * f, Hpp, Wpp, blk_nc),
                               lambda i: (0, 0, 0, i))],
        out_specs=pl.BlockSpec((Ho, Wo, blk_nc), lambda i: (0, 0, i)),
        compiler_params=pltpu.CompilerParams(
            dimension_semantics=("parallel",),
            vmem_limit_bytes=vmem_limit),
    )(xpp)

    # back to NCHW (drop the lane padding)
    out = out[:, :, :NC].transpose(2, 0, 1).reshape(N, C, Ho, Wo)
    return out


if __name__ == "__main__":
    key = jax.random.PRNGKey(0)
    x = jax.random.normal(key, (2, 4, 16, 16), dtype=jnp.float32)

    out = upfirdn_downsample(x, resample_kernel=(1, 3, 3, 1), factor=2)
    out = jax.block_until_ready(out)

    # pure-JAX reference: depthwise strided cross-correlation with flipped kernel
    k = make_resample_kernel((1, 3, 3, 1))
    pad = k.shape[0] - 2
    pad0, pad1 = (pad + 1) // 2, pad // 2
    C = x.shape[1]
    wref = jnp.tile(jnp.asarray(k[::-1, ::-1], dtype=x.dtype)[None, None],
                    (C, 1, 1, 1))
    ref = jax.lax.conv_general_dilated(
        x, wref, window_strides=(2, 2),
        padding=((pad0, pad1), (pad0, pad1)),
        dimension_numbers=("NCHW", "OIHW", "NCHW"),
        feature_group_count=C)

    assert out.shape == ref.shape == (2, 4, 8, 8), (out.shape, ref.shape)
    assert jnp.allclose(out, ref, atol=1e-5, rtol=1e-5), float(
        jnp.max(jnp.abs(out - ref)))
    print("KERNEL_OK")
</pallas_src>

<mosaic_0001>
module attributes {stable_mosaic.version = 11 : i64} {
  func.func @_upfirdn_down_kernel(%arg0: i32, %arg1: memref<4x10x10x128xf32, #tpu.memory_space<vmem>>, %arg2: memref<8x8x128xf32, #tpu.memory_space<vmem>>) attributes {dimension_semantics = [#tpu.dimension_semantics<parallel>], iteration_bounds = array<i64: 1>, scalar_prefetch = 0 : i64, scratch_operands = 0 : i64, tpu.core_type = #tpu.core_type<tc>, window_params = [{transform_indices = @transform_0, window_bounds = array<i64: 4, 10, 10, 128>}, {transform_indices = @transform_1, window_bounds = array<i64: 8, 8, 128>}]} {
    %cst = arith.constant 0.000000e+00 : f32
    %0 = vector.broadcast %cst : f32 to vector<8x8x128xf32>
    %c0 = arith.constant 0 : index
    %c0_0 = arith.constant 0 : index
    %c0_1 = arith.constant 0 : index
    %c0_2 = arith.constant 0 : index
    %1 = vector.load %arg1[%c0, %c0_0, %c0_1, %c0_2] : memref<4x10x10x128xf32, #tpu.memory_space<vmem>>, vector<1x8x8x128xf32>
    %2 = vector.shape_cast %1 : vector<1x8x8x128xf32> to vector<8x8x128xf32>
    %cst_3 = arith.constant 1.562500e-02 : f32
    %3 = vector.broadcast %cst_3 : f32 to vector<8x8x128xf32>
    %4 = arith.mulf %3, %2 : vector<8x8x128xf32>
    %5 = arith.addf %0, %4 : vector<8x8x128xf32>
    %c1 = arith.constant 1 : index
    %c0_4 = arith.constant 0 : index
    %c0_5 = arith.constant 0 : index
    %c0_6 = arith.constant 0 : index
    %6 = vector.load %arg1[%c1, %c0_4, %c0_5, %c0_6] : memref<4x10x10x128xf32, #tpu.memory_space<vmem>>, vector<1x8x8x128xf32>
    %7 = vector.shape_cast %6 : vector<1x8x8x128xf32> to vector<8x8x128xf32>
    %cst_7 = arith.constant 4.687500e-02 : f32
    %8 = vector.broadcast %cst_7 : f32 to vector<8x8x128xf32>
    %9 = arith.mulf %8, %7 : vector<8x8x128xf32>
    %10 = arith.addf %5, %9 : vector<8x8x128xf32>
    %c0_8 = arith.constant 0 : index
    %c0_9 = arith.constant 0 : index
    %c1_10 = arith.constant 1 : index
    %c0_11 = arith.constant 0 : index
    %11 = vector.load %arg1[%c0_8, %c0_9, %c1_10, %c0_11] : memref<4x10x10x128xf32, #tpu.memory_space<vmem>>, vector<1x8x8x128xf32>
    %12 = vector.shape_cast %11 : vector<1x8x8x128xf32> to vector<8x8x128xf32>
    %cst_12 = arith.constant 4.687500e-02 : f32
    %13 = vector.broadcast %cst_12 : f32 to vector<8x8x128xf32>
    %14 = arith.mulf %13, %12 : vector<8x8x128xf32>
    %15 = arith.addf %10, %14 : vector<8x8x128xf32>
    %c1_13 = arith.constant 1 : index
    %c0_14 = arith.constant 0 : index
    %c1_15 = arith.constant 1 : index
    %c0_16 = arith.constant 0 : index
    %16 = vector.load %arg1[%c1_13, %c0_14, %c1_15, %c0_16] : memref<4x10x10x128xf32, #tpu.memory_space<vmem>>, vector<1x8x8x128xf32>
    %17 = vector.shape_cast %16 : vector<1x8x8x128xf32> to vector<8x8x128xf32>
    %cst_17 = arith.constant 1.562500e-02 : f32
    %18 = vector.broadcast %cst_17 : f32 to vector<8x8x128xf32>
    %19 = arith.mulf %18, %17 : vector<8x8x128xf32>
    %20 = arith.addf %15, %19 : vector<8x8x128xf32>
    %c2 = arith.constant 2 : index
    %c0_18 = arith.constant 0 : index
    %c0_19 = arith.constant 0 : index
    %c0_20 = arith.constant 0 : index
    %21 = vector.load %arg1[%c2, %c0_18, %c0_19, %c0_20] : memref<4x10x10x128xf32, #tpu.memory_space<vmem>>, vector<1x8x8x128xf32>
    %22 = vector.shape_cast %21 : vector<1x8x8x128xf32> to vector<8x8x128xf32>
    %cst_21 = arith.constant 4.687500e-02 : f32
    %23 = vector.broadcast %cst_21 : f32 to vector<8x8x128xf32>
    %24 = arith.mulf %23, %22 : vector<8x8x128xf32>
    %25 = arith.addf %20, %24 : vector<8x8x128xf32>
    %c3 = arith.constant 3 : index
    %c0_22 = arith.constant 0 : index
    %c0_23 = arith.constant 0 : index
    %c0_24 = arith.constant 0 : index
    %26 = vector.load %arg1[%c3, %c0_22, %c0_23, %c0_24] : memref<4x10x10x128xf32, #tpu.memory_space<vmem>>, vector<1x8x8x128xf32>
    %27 = vector.shape_cast %26 : vector<1x8x8x128xf32> to vector<8x8x128xf32>
    %cst_25 = arith.constant 1.406250e-01 : f32
    %28 = vector.broadcast %cst_25 : f32 to vector<8x8x128xf32>
    %29 = arith.mulf %28, %27 : vector<8x8x128xf32>
    %30 = arith.addf %25, %29 : vector<8x8x128xf32>
    %c2_26 = arith.constant 2 : index
    %c0_27 = arith.constant 0 : index
    %c1_28 = arith.constant 1 : index
    %c0_29 = arith.constant 0 : index
    %31 = vector.load %arg1[%c2_26, %c0_27, %c1_28, %c0_29] : memref<4x10x10x128xf32, #tpu.memory_space<vmem>>, vector<1x8x8x128xf32>
    %32 = vector.shape_cast %31 : vector<1x8x8x128xf32> to vector<8x8x128xf32>
    %cst_30 = arith.constant 1.406250e-01 : f32
    %33 = vector.broadcast %cst_30 : f32 to vector<8x8x128xf32>
    %34 = arith.mulf %33, %32 : vector<8x8x128xf32>
    %35 = arith.addf %30, %34 : vector<8x8x128xf32>
    %c3_31 = arith.constant 3 : index
    %c0_32 = arith.constant 0 : index
    %c1_33 = arith.constant 1 : index
    %c0_34 = arith.constant 0 : index
    %36 = vector.load %arg1[%c3_31, %c0_32, %c1_33, %c0_34] : memref<4x10x10x128xf32, #tpu.memory_space<vmem>>, vector<1x8x8x128xf32>
    %37 = vector.shape_cast %36 : vector<1x8x8x128xf32> to vector<8x8x128xf32>
    %cst_35 = arith.constant 4.687500e-02 : f32
    %38 = vector.broadcast %cst_35 : f32 to vector<8x8x128xf32>
    %39 = arith.mulf %38, %37 : vector<8x8x128xf32>
    %40 = arith.addf %35, %39 : vector<8x8x128xf32>
    %c0_36 = arith.constant 0 : index
    %c1_37 = arith.constant 1 : index
    %c0_38 = arith.constant 0 : index
    %c0_39 = arith.constant 0 : index
    %41 = vector.load %arg1[%c0_36, %c1_37, %c0_38, %c0_39] : memref<4x10x10x128xf32, #tpu.memory_space<vmem>>, vector<1x8x8x128xf32>
    %42 = vector.shape_cast %41 : vector<1x8x8x128xf32> to vector<8x8x128xf32>
    %cst_40 = arith.constant 4.687500e-02 : f32
    %43 = vector.broadcast %cst_40 : f32 to vector<8x8x128xf32>
    %44 = arith.mulf %43, %42 : vector<8x8x128xf32>
    %45 = arith.addf %40, %44 : vector<8x8x128xf32>
    %c1_41 = arith.constant 1 : index
    %c1_42 = arith.constant 1 : index
    %c0_43 = arith.constant 0 : index
    %c0_44 = arith.constant 0 : index
    %46 = vector.load %arg1[%c1_41, %c1_42, %c0_43, %c0_44] : memref<4x10x10x128xf32, #tpu.memory_space<vmem>>, vector<1x8x8x128xf32>
    %47 = vector.shape_cast %46 : vector<1x8x8x128xf32> to vector<8x8x128xf32>
    %cst_45 = arith.constant 1.406250e-01 : f32
    %48 = vector.broadcast %cst_45 : f32 to vector<8x8x128xf32>
    %49 = arith.mulf %48, %47 : vector<8x8x128xf32>
    %50 = arith.addf %45, %49 : vector<8x8x128xf32>
    %c0_46 = arith.constant 0 : index
    %c1_47 = arith.constant 1 : index
    %c1_48 = arith.constant 1 : index
    %c0_49 = arith.constant 0 : index
    %51 = vector.load %arg1[%c0_46, %c1_47, %c1_48, %c0_49] : memref<4x10x10x128xf32, #tpu.memory_space<vmem>>, vector<1x8x8x128xf32>
    %52 = vector.shape_cast %51 : vector<1x8x8x128xf32> to vector<8x8x128xf32>
    %cst_50 = arith.constant 1.406250e-01 : f32
    %53 = vector.broadcast %cst_50 : f32 to vector<8x8x128xf32>
    %54 = arith.mulf %53, %52 : vector<8x8x128xf32>
    %55 = arith.addf %50, %54 : vector<8x8x128xf32>
    %c1_51 = arith.constant 1 : index
    %c1_52 = arith.constant 1 : index
    %c1_53 = arith.constant 1 : index
    %c0_54 = arith.constant 0 : index
    %56 = vector.load %arg1[%c1_51, %c1_52, %c1_53, %c0_54] : memref<4x10x10x128xf32, #tpu.memory_space<vmem>>, vector<1x8x8x128xf32>
    %57 = vector.shape_cast %56 : vector<1x8x8x128xf32> to vector<8x8x128xf32>
    %cst_55 = arith.constant 4.687500e-02 : f32
    %58 = vector.broadcast %cst_55 : f32 to vector<8x8x128xf32>
    %59 = arith.mulf %58, %57 : vector<8x8x128xf32>
    %60 = arith.addf %55, %59 : vector<8x8x128xf32>
    %c2_56 = arith.constant 2 : index
    %c1_57 = arith.constant 1 : index
    %c0_58 = arith.constant 0 : index
    %c0_59 = arith.constant 0 : index
    %61 = vector.load %arg1[%c2_56, %c1_57, %c0_58, %c0_59] : memref<4x10x10x128xf32, #tpu.memory_space<vmem>>, vector<1x8x8x128xf32>
    %62 = vector.shape_cast %61 : vector<1x8x8x128xf32> to vector<8x8x128xf32>
    %cst_60 = arith.constant 1.562500e-02 : f32
    %63 = vector.broadcast %cst_60 : f32 to vector<8x8x128xf32>
    %64 = arith.mulf %63, %62 : vector<8x8x128xf32>
    %65 = arith.addf %60, %64 : vector<8x8x128xf32>
    %c3_61 = arith.constant 3 : index
    %c1_62 = arith.constant 1 : index
    %c0_63 = arith.constant 0 : index
    %c0_64 = arith.constant 0 : index
    %66 = vector.load %arg1[%c3_61, %c1_62, %c0_63, %c0_64] : memref<4x10x10x128xf32, #tpu.memory_space<vmem>>, vector<1x8x8x128xf32>
    %67 = vector.shape_cast %66 : vector<1x8x8x128xf32> to vector<8x8x128xf32>
    %cst_65 = arith.constant 4.687500e-02 : f32
    %68 = vector.broadcast %cst_65 : f32 to vector<8x8x128xf32>
    %69 = arith.mulf %68, %67 : vector<8x8x128xf32>
    %70 = arith.addf %65, %69 : vector<8x8x128xf32>
    %c2_66 = arith.constant 2 : index
    %c1_67 = arith.constant 1 : index
    %c1_68 = arith.constant 1 : index
    %c0_69 = arith.constant 0 : index
    %71 = vector.load %arg1[%c2_66, %c1_67, %c1_68, %c0_69] : memref<4x10x10x128xf32, #tpu.memory_space<vmem>>, vector<1x8x8x128xf32>
    %72 = vector.shape_cast %71 : vector<1x8x8x128xf32> to vector<8x8x128xf32>
    %cst_70 = arith.constant 4.687500e-02 : f32
    %73 = vector.broadcast %cst_70 : f32 to vector<8x8x128xf32>
    %74 = arith.mulf %73, %72 : vector<8x8x128xf32>
    %75 = arith.addf %70, %74 : vector<8x8x128xf32>
    %c3_71 = arith.constant 3 : index
    %c1_72 = arith.constant 1 : index
    %c1_73 = arith.constant 1 : index
    %c0_74 = arith.constant 0 : index
    %76 = vector.load %arg1[%c3_71, %c1_72, %c1_73, %c0_74] : memref<4x10x10x128xf32, #tpu.memory_space<vmem>>, vector<1x8x8x128xf32>
    %77 = vector.shape_cast %76 : vector<1x8x8x128xf32> to vector<8x8x128xf32>
    %cst_75 = arith.constant 1.562500e-02 : f32
    %78 = vector.broadcast %cst_75 : f32 to vector<8x8x128xf32>
    %79 = arith.mulf %78, %77 : vector<8x8x128xf32>
    %80 = arith.addf %75, %79 : vector<8x8x128xf32>
    %c0_76 = arith.constant 0 : index
    %c0_77 = arith.constant 0 : index
    %c0_78 = arith.constant 0 : index
    %81 = vector.load %arg2[%c0_76, %c0_77, %c0_78] : memref<8x8x128xf32, #tpu.memory_space<vmem>>, vector<8x8x128xf32>
    tpu.vector_store %arg2[%c0_76, %c0_77, %c0_78], %80 {strides = array<i32>} : memref<8x8x128xf32, #tpu.memory_space<vmem>>, vector<8x8x128xf32>,
    return
  }
  func.func @transform_0(%arg0: i32) -> (i32, i32, i32, i32) {
    %c0_i32 = arith.constant 0 : i32
    %c0_i32_0 = arith.constant 0 : i32
    %c0_i32_1 = arith.constant 0 : i32
    %c0_i32_2 = arith.constant 0 : i32
    return %c0_i32, %c0_i32_0, %c0_i32_1, %arg0 : i32, i32, i32, i32
  }
  func.func @transform_1(%arg0: i32) -> (i32, i32, i32) {
    %c0_i32 = arith.constant 0 : i32
    %c0_i32_0 = arith.constant 0 : i32
    %c0_i32_1 = arith.constant 0 : i32
    return %c0_i32, %c0_i32_0, %arg0 : i32, i32, i32
  }
}

</mosaic_0001>

<bundles_post_ra>
// kernel: tpu_custom_call.1
= control target key start
LH: loop header
LB: loop body
LE: loop exit
PB: predicated region body
PF: predicated region fallthrough
CT: control target
= control target key end

     0   :  { %s830_s0 = inlined_call_operand.vmem [shape: f32[4,10,10,128], index: 0, kind: input, shape index: {}]   ;;  %s831_s1 = inlined_call_operand.hbm [shape: f32[8,8,128], index: 1, kind: output, shape index: {}]  }
   0x1   :  { %v9_v0 = vld [vmem:[%s830_s0] sm:$0xff]  ;;  %v474_v10 = vld [vmem:[%s830_s0 + $0x10] sm:$0xff] }
   0x2   :  { %v426_v1 = vld [vmem:[%s830_s0 + $0xa0] sm:$0xff]  ;;  %v17_v3 = vmul.f32 0.015625, %v9_v0  ;;  %v482_v11 = vld [vmem:[%s830_s0 + $0xb0] sm:$0xff]  ;;  %v18_v19 = vmul.f32 0.015625, %v474_v10  ;;  %v213_v32 = vmul.f32 0.046875, %v474_v10 }
   0x3   :  { %v58_v2 = vld [vmem:[%s830_s0 + $0x1] sm:$0xff]  ;;  %v42_v4 = vmul.f32 0.046875, %v426_v1  ;;  %v490_v12 = vld [vmem:[%s830_s0 + $0x11] sm:$0xff]  ;;  %v43_v20 = vmul.f32 0.046875, %v482_v11  ;;  %v238_v33 = vmul.f32 0.140625, %v482_v11 }
   0x4   :  { %v66_v5 = vmul.f32 0.046875, %v58_v2  ;;  %v434_v6 = vld [vmem:[%s830_s0 + $0xa1] sm:$0xff]  ;;  %v498_v18 = vld [vmem:[%s830_s0 + $0xb1] sm:$0xff]  ;;  %v67_v21 = vmul.f32 0.046875, %v490_v12  ;;  %v262_v34 = vmul.f32 0.140625, %v490_v12 }
   0x5   :  { %v442_v7 = vld [vmem:[%s830_s0 + $0x140] sm:$0xff]  ;;  %v50_v8 = vadd.f32 %v42_v4, %v17_v3  ;;  %v90_v9 = vmul.f32 0.015625, %v434_v6  ;;  %v506_v24 = vld [vmem:[%s830_s0 + $0x150] sm:$0xff]  ;;  %v51_v27 = vadd.f32 %v43_v20, %v18_v19  ;;  %v91_v28 = vmul.f32 0.015625, %v498_v18 }
   0x6   :  { %v450_v13 = vld [vmem:[%s830_s0 + $0x1e0] sm:$0xff]  ;;  %v115_v15 = vmul.f32 0.046875, %v442_v7  ;;  %v514_v35 = vld [vmem:[%s830_s0 + $0x1f0] sm:$0xff]  ;;  %v631_v37 = vmul.f32 0.046875, %v498_v18  ;;  %v633_v38 = vmul.f32 0.015625, %v506_v24  ;;  %v116_v40 = vmul.f32 0.046875, %v506_v24 }
   0x7   :  { %v74_v14 = vadd.f32 %v66_v5, %v50_v8  ;;  %v458_v16 = vld [vmem:[%s830_s0 + $0x141] sm:$0xff]  ;;  %v140_v23 = vmul.f32 0.140625, %v450_v13  ;;  %v75_v39 = vadd.f32 %v67_v21, %v51_v27  ;;  %v638_v43 = vmul.f32 0.046875, %v514_v35  ;;  %v522_v44 = vld [vmem:[%s830_s0 + $0x151] sm:$0xff] }
   0x8   :  { %v466_v17 = vld [vmem:[%s830_s0 + $0x1e1] sm:$0xff]  ;;  %v164_v25 = vmul.f32 0.140625, %v458_v16  ;;  %v530_v45 = vld [vmem:[%s830_s0 + $0x1f1] sm:$0xff]  ;;  %v646_v48 = vmul.f32 0.046875, %v522_v44  ;;  %v141_v50 = vmul.f32 0.140625, %v514_v35  ;;  %v165_v58 = vmul.f32 0.140625, %v522_v44 }
   0x9   :  { %v98_v22 = vadd.f32 %v90_v9, %v74_v14  ;;  %v188_v26 = vmul.f32 0.046875, %v466_v17  ;;  %v475_v29 = vld [vmem:[%s830_s0 + $0x20] sm:$0xff]  ;;  %v99_v49 = vadd.f32 %v91_v28, %v75_v39  ;;  %v651_v54 = vmul.f32 0.015625, %v530_v45  ;;  %v476_v62 = vld [vmem:[%s830_s0 + $0x30] sm:$0xff] }
   0xa   :  { %v483_v30 = vld [vmem:[%s830_s0 + $0xc0] sm:$0xff]  ;;  %v19_v46 = vmul.f32 0.015625, %v475_v29  ;;  %v189_v59 = vmul.f32 0.046875, %v530_v45  ;;  %v214_v60 = vmul.f32 0.046875, %v475_v29  ;;  %v484_v3 = vld [vmem:[%s830_s0 + $0xd0] sm:$0xff]  ;;  %v20_v14 = vmul.f32 0.015625, %v476_v62 }
   0xb   :  { %v123_v31 = vadd.f32 %v115_v15, %v98_v22  ;;  %v491_v36 = vld [vmem:[%s830_s0 + $0x21] sm:$0xff]  ;;  %v44_v47 = vmul.f32 0.046875, %v483_v30  ;;  %v124_v57 = vadd.f32 %v116_v40, %v99_v49  ;;  %v239_v0 = vmul.f32 0.140625, %v483_v30  ;;  %v492_v4 = vld [vmem:[%s830_s0 + $0x31] sm:$0xff] }
   0xc   :  { %v499_v41 = vld [vmem:[%s830_s0 + $0xc1] sm:$0xff]  ;;  %v68_v52 = vmul.f32 0.046875, %v491_v36  ;;  %v263_v6 = vmul.f32 0.140625, %v491_v36  ;;  %v500_v13 = vld [vmem:[%s830_s0 + $0xd1] sm:$0xff]  ;;  %v45_v18 = vmul.f32 0.046875, %v484_v3  ;;  %v69_v19 = vmul.f32 0.046875, %v492_v4 }
   0xd   :  { %v148_v42 = vadd.f32 %v140_v23, %v123_v31  ;;  %v507_v51 = vld [vmem:[%s830_s0 + $0x160] sm:$0xff]  ;;  %v52_v55 = vadd.f32 %v44_v47, %v19_v46  ;;  %v92_v56 = vmul.f32 0.015625, %v499_v41  ;;  %v149_v5 = vadd.f32 %v141_v50, %v124_v57  ;;  %v508_v24 = vld [vmem:[%s830_s0 + $0x170] sm:$0xff] }
   0xe   :  { %v515_v61 = vld [vmem:[%s830_s0 + $0x200] sm:$0xff]  ;;  %v117_v2 = vmul.f32 0.046875, %v507_v51  ;;  %v287_v7 = vmul.f32 0.046875, %v499_v41  ;;  %v665_v8 = vmul.f32 0.015625, %v507_v51  ;;  %v53_v27 = vadd.f32 %v45_v18, %v20_v14 }
   0xf   :  { %v172_v53 = vadd.f32 %v164_v25, %v148_v42  ;;  %v76_v1 = vadd.f32 %v68_v52, %v52_v55  ;;  %v523_v9 = vld [vmem:[%s830_s0 + $0x161] sm:$0xff]  ;;  %v142_v12 = vmul.f32 0.140625, %v515_v61  ;;  %v173_v15 = vadd.f32 %v165_v58, %v149_v5 }
  0x10   :  { %v673_v16 = vmul.f32 0.046875, %v515_v61  ;;  %v531_v17 = vld [vmem:[%s830_s0 + $0x201] sm:$0xff]  ;;  %v678_v21 = vmul.f32 0.046875, %v523_v9  ;;  %v166_v23 = vmul.f32 0.140625, %v523_v9  ;;  %v93_v28 = vmul.f32 0.015625, %v500_v13 }
  0x11   :  { %v196_v63 = vadd.f32 %v188_v26, %v172_v53  ;;  %v100_v11 = vadd.f32 %v92_v56, %v76_v1  ;;  %v197_v25 = vadd.f32 %v189_v59, %v173_v15  ;;  %v683_v26 = vmul.f32 0.015625, %v531_v17 }
  0x12   :  { %v190_v31 = vmul.f32 0.046875, %v531_v17 }
  0x13   :  { %v221_v10 = vadd.f32 %v213_v32, %v196_v63  ;;  %v125_v22 = vadd.f32 %v117_v2, %v100_v11  ;;  %v215_v32 = vmul.f32 0.046875, %v476_v62 }
  0x15   :  { %v246_v20 = vadd.f32 %v238_v33, %v221_v10  ;;  %v150_v30 = vadd.f32 %v142_v12, %v125_v22  ;;  %v516_v33 = vld [vmem:[%s830_s0 + $0x210] sm:$0xff] }
  0x17   :  { %v270_v29 = vadd.f32 %v262_v34, %v246_v20 }
  0x18   :  { %6 = vsyncpa [#allocation3], 0  ;;  %v222_v35 = vadd.f32 %v214_v60, %v197_v25  ;;  %v240_v36 = vmul.f32 0.140625, %v484_v3  ;;  %v77_v39 = vadd.f32 %v69_v19, %v53_v27  ;;  %v118_v40 = vmul.f32 0.046875, %v508_v24  ;;  %v477_v41 = vld [vmem:[%s830_s0 + $0x40] sm:$0xff]  ;;  %v524_v47 = vld [vmem:[%s830_s0 + $0x171] sm:$0xff] }
  0x19   :  { %v485_v34 = vld [vmem:[%s830_s0 + $0xe0] sm:$0xff]  ;;  %v294_v42 = vadd.f32 %v631_v37, %v270_v29  ;;  %v174_v44 = vadd.f32 %v166_v23, %v150_v30  ;;  %v264_v45 = vmul.f32 0.140625, %v492_v4  ;;  %v288_v46 = vmul.f32 0.046875, %v500_v13  ;;  %v532_v57 = vld [vmem:[%s830_s0 + $0x211] sm:$0xff]  ;;  %s567_s5 = smov [#allocation2]   ;;  %s414_s9 = sshll.u32 %s831_s1, 4  ;;  %s415_s9 = int_to_ptr.hbm [resolvable:$true] %s414_s9 }
  0x1a   :  { %v493_v49 = vld [vmem:[%s830_s0 + $0x41] sm:$0xff]  ;;  %v247_v50 = vadd.f32 %v239_v0, %v222_v35  ;;  %v313_v51 = vmul.f32 0.015625, %v508_v24  ;;  %v101_v52 = vadd.f32 %v93_v28, %v77_v39  ;;  %v143_v53 = vmul.f32 0.140625, %v516_v33  ;;  %v494_v29 = vld [vmem:[%s830_s0 + $0x51] sm:$0xff]  ;;  %s412_s6 = sshll.u32 %s567_s5, 4  ;;  %s568_s10 = smov 128   ;;  %s413_s6 = int_to_ptr.vmem [resolvable:$true] %s412_s6 }
  0x1b   :  { %v501_v55 = vld [vmem:[%s830_s0 + $0xe1] sm:$0xff]  ;;  %v319_v37 = vadd.f32 %v633_v38, %v294_v42  ;;  %v198_v56 = vadd.f32 %v190_v31, %v174_v44  ;;  %v21_v58 = vmul.f32 0.015625, %v477_v41  ;;  %v46_v59 = vmul.f32 0.046875, %v485_v34  ;;  %v502_v39 = vld [vmem:[%s830_s0 + $0xf1] sm:$0xff]  ;;  %s569_s11 = smov 8  }
  0x1c   :  { %v271_v60 = vadd.f32 %v263_v6, %v247_v50  ;;  %v126_v61 = vadd.f32 %v118_v40, %v101_v52  ;;  %v167_v62 = vmul.f32 0.140625, %v524_v47  ;;  %v509_v63 = vld [vmem:[%s830_s0 + $0x180] sm:$0xff]  ;;  %v70_v0 = vmul.f32 0.046875, %v493_v49 }
  0x1d   :  { %v344_v1 = vadd.f32 %v638_v43, %v319_v37  ;;  %v223_v2 = vadd.f32 %v215_v32, %v198_v56  ;;  %v54_v3 = vadd.f32 %v46_v59, %v21_v58  ;;  %v94_v38 = vmul.f32 0.015625, %v501_v55  ;;  %v517_v6 = vld [vmem:[%s830_s0 + $0x220] sm:$0xff]  ;;  %v518_v58 = vld [vmem:[%s830_s0 + $0x230] sm:$0xff] }
  0x1e   :  { %v295_v4 = vadd.f32 %v287_v7, %v271_v60  ;;  %v338_v5 = vmul.f32 0.046875, %v516_v33  ;;  %v151_v9 = vadd.f32 %v143_v53, %v126_v61  ;;  %v191_v10 = vmul.f32 0.046875, %v532_v57  ;;  %v525_v7 = vld [vmem:[%s830_s0 + $0x181] sm:$0xff] }
  0x1f   :  { %v368_v11 = vadd.f32 %v646_v48, %v344_v1  ;;  %v248_v12 = vadd.f32 %v240_v36, %v223_v2  ;;  %v78_v13 = vadd.f32 %v70_v0, %v54_v3  ;;  %v119_v14 = vmul.f32 0.046875, %v509_v63  ;;  %v724_v22 = vld [vmem:[%s830_s0 + $0x221] sm:$0xff] }
  0x20   :  { %v320_v15 = vadd.f32 %v665_v8, %v295_v4  ;;  %v362_v17 = vmul.f32 0.046875, %v524_v47  ;;  %v175_v43 = vadd.f32 %v167_v62, %v151_v9  ;;  %v216_v18 = vmul.f32 0.046875, %v477_v41  ;;  %v478_v8 = vld [vmem:[%s830_s0 + $0x50] sm:$0xff]  ;;  %v479_v62 = vld [vmem:[%s830_s0 + $0x60] sm:$0xff] }
  0x21   :  { %v392_v19 = vadd.f32 %v651_v54, %v368_v11  ;;  %v272_v20 = vadd.f32 %v264_v45, %v248_v12  ;;  %v102_v48 = vadd.f32 %v94_v38, %v78_v13  ;;  %v144_v23 = vmul.f32 0.140625, %v517_v6  ;;  %v486_v54 = vld [vmem:[%s830_s0 + $0xf0] sm:$0xff]  ;;  %v487_v3 = vld [vmem:[%s830_s0 + $0x100] sm:$0xff] }
  0x22   :  { %v345_v24 = vadd.f32 %v673_v16, %v320_v15  ;;  %v386_v25 = vmul.f32 0.015625, %v532_v57  ;;  %v199_v27 = vadd.f32 %v191_v10, %v175_v43  ;;  %v241_v28 = vmul.f32 0.140625, %v485_v34  ;;  %v495_v38 = vld [vmem:[%s830_s0 + $0x61] sm:$0xff]  ;;  %v534_v9 = vld [vmem:[%s830_s0 + $0x231] sm:$0xff] }
  0x23   :  { %400 = vst [vmem:[#allocation2] sm:$0xff] %v392_v19  ;;  %v296_v30 = vadd.f32 %v288_v46, %v272_v20  ;;  %v265_v31 = vmul.f32 0.140625, %v493_v49  ;;  %v127_v32 = vadd.f32 %v119_v14, %v102_v48  ;;  %v168_v33 = vmul.f32 0.140625, %v525_v7  ;;  %v503_v14 = vld [vmem:[%s830_s0 + $0x101] sm:$0xff] }
  0x24   :  { %v369_v35 = vadd.f32 %v678_v21, %v345_v24  ;;  %v224_v36 = vadd.f32 %v216_v18, %v199_v27  ;;  %v192_v16 = vmul.f32 0.046875, %v724_v22  ;;  %v22_v40 = vmul.f32 0.015625, %v478_v8  ;;  %v510_v21 = vld [vmem:[%s830_s0 + $0x190] sm:$0xff] }
  0x25   :  { %v321_v41 = vadd.f32 %v313_v51, %v296_v30  ;;  %v152_v34 = vadd.f32 %v144_v23, %v127_v32  ;;  %v47_v42 = vmul.f32 0.046875, %v486_v54  ;;  %v71_v44 = vmul.f32 0.046875, %v494_v29 }
  0x26   :  { %v393_v45 = vadd.f32 %v683_v26, %v369_v35  ;;  %v249_v46 = vadd.f32 %v241_v28, %v224_v36  ;;  %v289_v47 = vmul.f32 0.046875, %v501_v55  ;;  %v217_v49 = vmul.f32 0.046875, %v478_v8  ;;  %v526_v55 = vld [vmem:[%s830_s0 + $0x191] sm:$0xff]  ;;  %v511_v8 = vld [vmem:[%s830_s0 + $0x1a0] sm:$0xff] }
  0x27   :  { %v346_v50 = vadd.f32 %v338_v5, %v321_v41  ;;  %v176_v52 = vadd.f32 %v168_v33, %v152_v34  ;;  %v55_v53 = vadd.f32 %v47_v42, %v22_v40  ;;  %v95_v37 = vmul.f32 0.015625, %v502_v39  ;;  %v480_v36 = vld [vmem:[%s830_s0 + $0x70] sm:$0xff] }
  0x28   :  { %401 = vst [vmem:[#allocation2 + $0x8] sm:$0xff] %v393_v45  ;;  %v273_v56 = vadd.f32 %v265_v31, %v249_v46  ;;  %v314_v57 = vmul.f32 0.015625, %v509_v63  ;;  %v242_v51 = vmul.f32 0.140625, %v486_v54  ;;  %v120_v61 = vmul.f32 0.046875, %v510_v21  ;;  %v519_v31 = vld [vmem:[%s830_s0 + $0x240] sm:$0xff] }
  0x29   :  { %v370_v26 = vadd.f32 %v362_v17, %v346_v50  ;;  %v200_v59 = vadd.f32 %v192_v16, %v176_v52  ;;  %v79_v60 = vadd.f32 %v71_v44, %v55_v53  ;;  %v339_v1 = vmul.f32 0.046875, %v517_v6  ;;  %v488_v16 = vld [vmem:[%s830_s0 + $0x110] sm:$0xff]  ;;  %v527_v44 = vld [vmem:[%s830_s0 + $0x1a1] sm:$0xff] }
  0x2a   :  { %v297_v0 = vadd.f32 %v289_v47, %v273_v56  ;;  %v363_v63 = vmul.f32 0.046875, %v525_v7  ;;  %v266_v2 = vmul.f32 0.140625, %v494_v29  ;;  %v145_v11 = vmul.f32 0.140625, %v518_v58  ;;  %v535_v52 = vld [vmem:[%s830_s0 + $0x241] sm:$0xff] }
  0x2b   :  { %v394_v4 = vadd.f32 %v386_v25, %v370_v26  ;;  %v225_v5 = vadd.f32 %v217_v49, %v200_v59  ;;  %v103_v10 = vadd.f32 %v95_v37, %v79_v60  ;;  %v290_v6 = vmul.f32 0.046875, %v502_v39  ;;  %v496_v39 = vld [vmem:[%s830_s0 + $0x71] sm:$0xff] }
  0x2c   :  { %v322_v12 = vadd.f32 %v314_v57, %v297_v0  ;;  %v169_v13 = vmul.f32 0.140625, %v526_v55  ;;  %v23_v15 = vmul.f32 0.015625, %v479_v62  ;;  %v48_v18 = vmul.f32 0.046875, %v487_v3  ;;  %v512_v59 = vld [vmem:[%s830_s0 + $0x1b0] sm:$0xff] }
  0x2d   :  { %402 = vst [vmem:[#allocation2 + $0x10] sm:$0xff] %v394_v4  ;;  %v250_v17 = vadd.f32 %v242_v51, %v225_v5  ;;  %v128_v43 = vadd.f32 %v120_v61, %v103_v10  ;;  %v72_v7 = vmul.f32 0.046875, %v495_v38  ;;  %v387_v20 = vmul.f32 0.015625, %v724_v22 }
  0x2e   :  { %v347_v19 = vadd.f32 %v339_v1, %v322_v12  ;;  %v315_v48 = vmul.f32 0.015625, %v510_v21  ;;  %v193_v23 = vmul.f32 0.046875, %v534_v9  ;;  %v56_v27 = vadd.f32 %v48_v18, %v23_v15  ;;  %v504_v21 = vld [vmem:[%s830_s0 + $0x111] sm:$0xff] }
  0x2f   :  { %v274_v24 = vadd.f32 %v266_v2, %v250_v17  ;;  %v153_v25 = vadd.f32 %v145_v11, %v128_v43  ;;  %v96_v28 = vmul.f32 0.015625, %v503_v14  ;;  %v340_v29 = vmul.f32 0.046875, %v518_v58  ;;  %v520_v2 = vld [vmem:[%s830_s0 + $0x250] sm:$0xff] }
  0x30   :  { %v371_v54 = vadd.f32 %v363_v63, %v347_v19  ;;  %v218_v30 = vmul.f32 0.046875, %v479_v62  ;;  %v80_v22 = vadd.f32 %v72_v7, %v56_v27  ;;  %v121_v35 = vmul.f32 0.046875, %v511_v8  ;;  %v528_v12 = vld [vmem:[%s830_s0 + $0x1b1] sm:$0xff] }
  0x31   :  { %v298_v32 = vadd.f32 %v290_v6, %v274_v24  ;;  %v177_v33 = vadd.f32 %v169_v13, %v153_v25  ;;  %v364_v41 = vmul.f32 0.046875, %v526_v55  ;;  %v388_v34 = vmul.f32 0.015625, %v534_v9  ;;  %v536_v18 = vld [vmem:[%s830_s0 + $0x251] sm:$0xff]  ;;  %v481_v24 = vld [vmem:[%s830_s0 + $0x80] sm:$0xff] }
  0x32   :  { %v395_v40 = vadd.f32 %v387_v20, %v371_v54  ;;  %v243_v42 = vmul.f32 0.140625, %v487_v3  ;;  %v104_v47 = vadd.f32 %v96_v28, %v80_v22  ;;  %v146_v49 = vmul.f32 0.140625, %v519_v31 }
  0x33   :  { %v323_v45 = vadd.f32 %v315_v48, %v298_v32  ;;  %v201_v46 = vadd.f32 %v193_v23, %v177_v33  ;;  %v267_v50 = vmul.f32 0.140625, %v495_v38  ;;  %v24_v53 = vmul.f32 0.015625, %v480_v36 }
  0x34   :  { %403 = vst [vmem:[#allocation2 + $0x18] sm:$0xff] %v395_v40  ;;  %v49_v37 = vmul.f32 0.046875, %v488_v16  ;;  %v73_v56 = vmul.f32 0.046875, %v496_v39  ;;  %v129_v58 = vadd.f32 %v121_v35, %v104_v47  ;;  %v170_v26 = vmul.f32 0.140625, %v527_v44 }
  0x35   :  { %v348_v57 = vadd.f32 %v340_v29, %v323_v45  ;;  %v226_v51 = vadd.f32 %v218_v30, %v201_v46  ;;  %v291_v55 = vmul.f32 0.046875, %v503_v14  ;;  %v97_v61 = vmul.f32 0.015625, %v504_v21 }
  0x36   :  { %v57_v60 = vadd.f32 %v49_v37, %v24_v53  ;;  %v154_v1 = vadd.f32 %v146_v49, %v129_v58  ;;  %v194_v63 = vmul.f32 0.046875, %v535_v52  ;;  %v316_v3 = vmul.f32 0.015625, %v511_v8 }
  0x37   :  { %v372_v62 = vadd.f32 %v364_v41, %v348_v57  ;;  %v251_v0 = vadd.f32 %v243_v42, %v226_v51  ;;  %v122_v4 = vmul.f32 0.046875, %v512_v59  ;;  %v219_v11 = vmul.f32 0.046875, %v480_v36 }
  0x38   :  { %v81_v38 = vadd.f32 %v73_v56, %v57_v60  ;;  %v178_v10 = vadd.f32 %v170_v26, %v154_v1  ;;  %v147_v13 = vmul.f32 0.140625, %v520_v2  ;;  %v341_v15 = vmul.f32 0.046875, %v519_v31  ;;  %v489_v31 = vld [vmem:[%s830_s0 + $0x120] sm:$0xff] }
  0x39   :  { %v396_v5 = vadd.f32 %v388_v34, %v372_v62  ;;  %v275_v9 = vadd.f32 %v267_v50, %v251_v0  ;;  %v244_v43 = vmul.f32 0.140625, %v488_v16  ;;  %v171_v19 = vmul.f32 0.140625, %v528_v12  ;;  %v497_v16 = vld [vmem:[%s830_s0 + $0x81] sm:$0xff] }
  0x3a   :  { %v105_v6 = vadd.f32 %v97_v61, %v81_v38  ;;  %v202_v17 = vadd.f32 %v194_v63, %v178_v10  ;;  %v365_v48 = vmul.f32 0.046875, %v527_v44  ;;  %v268_v8 = vmul.f32 0.140625, %v496_v39  ;;  %v505_v44 = vld [vmem:[%s830_s0 + $0x121] sm:$0xff] }
  0x3b   :  { %404 = vst [vmem:[#allocation2 + $0x20] sm:$0xff] %v396_v5  ;;  %v299_v14 = vadd.f32 %v291_v55, %v275_v9  ;;  %v195_v27 = vmul.f32 0.046875, %v536_v18  ;;  %v389_v54 = vmul.f32 0.015625, %v535_v52  ;;  %v292_v30 = vmul.f32 0.046875, %v504_v21  ;;  %v513_v21 = vld [vmem:[%s830_s0 + $0x1c0] sm:$0xff] }
  0x3c   :  { %v130_v7 = vadd.f32 %v122_v4, %v105_v6  ;;  %v227_v23 = vadd.f32 %v219_v11, %v202_v17  ;;  %v220_v33 = vmul.f32 0.046875, %v481_v24  ;;  %v317_v36 = vmul.f32 0.015625, %v512_v59  ;;  %v521_v56 = vld [vmem:[%s830_s0 + $0x260] sm:$0xff] }
  0x3d   :  { %v324_v20 = vadd.f32 %v316_v3, %v299_v14  ;;  %v245_v40 = vmul.f32 0.140625, %v489_v31  ;;  %v342_v42 = vmul.f32 0.046875, %v520_v2  ;;  %v269_v46 = vmul.f32 0.140625, %v497_v16  ;;  %v529_v26 = vld [vmem:[%s830_s0 + $0x1c1] sm:$0xff] }
  0x3e   :  { %v155_v25 = vadd.f32 %v147_v13, %v130_v7  ;;  %v252_v29 = vadd.f32 %v244_v43, %v227_v23  ;;  %v366_v49 = vmul.f32 0.046875, %v528_v12  ;;  %v293_v52 = vmul.f32 0.046875, %v505_v44  ;;  %v537_v61 = vld [vmem:[%s830_s0 + $0x261] sm:$0xff] }
  0x3f   :  { %v349_v28 = vadd.f32 %v341_v15, %v324_v20  ;;  %v390_v37 = vmul.f32 0.015625, %v536_v18  ;;  %v318_v51 = vmul.f32 0.015625, %v513_v21  ;;  %v343_v55 = vmul.f32 0.046875, %v521_v56 }
  0x40   :  { %v179_v32 = vadd.f32 %v171_v19, %v155_v25  ;;  %v276_v35 = vadd.f32 %v268_v8, %v252_v29  ;;  %v367_v0 = vmul.f32 0.046875, %v529_v26  ;;  %v391_v63 = vmul.f32 0.015625, %v537_v61 }
  0x41   :  { %v373_v22 = vadd.f32 %v365_v48, %v349_v28 }
  0x42   :  { %v203_v39 = vadd.f32 %v195_v27, %v179_v32  ;;  %v300_v34 = vadd.f32 %v292_v30, %v276_v35 }
  0x43   :  { %v397_v41 = vadd.f32 %v389_v54, %v373_v22 }
  0x44   :  { %v228_v45 = vadd.f32 %v220_v33, %v203_v39  ;;  %v325_v47 = vadd.f32 %v317_v36, %v300_v34 }
  0x45   :  { %405 = vst [vmem:[#allocation2 + $0x28] sm:$0xff] %v397_v41 }
  0x46   :  { %v253_v50 = vadd.f32 %v245_v40, %v228_v45  ;;  %v350_v53 = vadd.f32 %v342_v42, %v325_v47 }
  0x48   :  { %v277_v57 = vadd.f32 %v269_v46, %v253_v50  ;;  %v374_v58 = vadd.f32 %v366_v49, %v350_v53 }
  0x4a   :  { %v301_v59 = vadd.f32 %v293_v52, %v277_v57  ;;  %v398_v60 = vadd.f32 %v390_v37, %v374_v58 }
  0x4c   :  { %v326_v62 = vadd.f32 %v318_v51, %v301_v59  ;;  %406 = vst [vmem:[#allocation2 + $0x30] sm:$0xff] %v398_v60 }
  0x4e   :  { %v351_v1 = vadd.f32 %v343_v55, %v326_v62 }
  0x50   :  { %v375_v2 = vadd.f32 %v367_v0, %v351_v1 }
  0x52   :  { %v399_v3 = vadd.f32 %v391_v63, %v375_v2 }
  0x54   :  { %407 = vst [vmem:[#allocation2 + $0x38] sm:$0xff] %v399_v3 }
  0x55   :  { %420 = dma.vmem_to_hbm [thread:$0]  %s413_s6, 1024, %s415_s9, [#allocation3], %s568_s10, %s568_s10, %s569_s11  }
  0x56   :  { %565 = dma.done.wait [#allocation3], 1024  }
  0x57   :  { %566 = vsyncadd [#allocation3], 4294966272 }
  0x58   :  { %425 = vsyncpa [#allocation3], 1 }

</bundles_post_ra>
